<compile_context>
chip_gen: v7x
topology: tpu7x:2x2x1
jax: 0.10.0
libtpu: 0.0.40
codegen_flags: <defaults>
</compile_context>

<pallas_src>
import functools
import math

import jax
import jax.numpy as jnp
from jax.experimental import pallas as pl
from jax.experimental.pallas import tpu as pltpu

_LANE = 128
# ~2 MiB of f32 per block buffer: good pipelining while staying far below the
# scoped VMEM limit (double-buffered input + output ~= 8 MiB).
_BLOCK_ELEMS = 512 * 1024


def _noise_kernel_tpu(seed_ref, x_ref, o_ref, *, mean, std, split_axis):
    """out = x + N(mean, std), noise generated on-chip (TPU hardware PRNG)."""
    # Unique PRNG stream per grid block (blocks may run on either TensorCore).
    pltpu.prng_seed(seed_ref[0] + pl.program_id(0))

    rows, cols = x_ref.shape
    mean_f = jnp.float32(mean)
    std_f = jnp.float32(std)
    inv24 = jnp.float32(1.0 / (1 << 24))
    two_pi = jnp.float32(2.0 * math.pi)

    def uniform_open(shape):
        # (0, 1]: never zero, so log() needs no clamp.
        bits = pltpu.bitcast(pltpu.prng_random_bits(shape), jnp.uint32)
        return ((bits >> 8) + 1).astype(jnp.float32) * inv24

    def uniform(shape):
        # [0, 1), exact in float32 (24 significant bits).
        bits = pltpu.bitcast(pltpu.prng_random_bits(shape), jnp.uint32)
        return (bits >> 8).astype(jnp.float32) * inv24

    def box_muller_pair(shape):
        u1 = uniform_open(shape)
        u2 = uniform(shape)
        r = jnp.sqrt(jnp.float32(-2.0) * jnp.log(u1))
        theta = two_pi * u2
        return r * jnp.cos(theta), r * jnp.sin(theta)

    if split_axis == 1:
        # Lane split: cos branch fills the left lane-half, sin branch the
        # right lane-half (both halves are multiples of 128 lanes).
        half = cols // 2
        z0, z1 = box_muller_pair((rows, half))
        o_ref[:, :half] = x_ref[:, :half] + (mean_f + std_f * z0).astype(o_ref.dtype)
        o_ref[:, half:] = x_ref[:, half:] + (mean_f + std_f * z1).astype(o_ref.dtype)
    elif split_axis == 0:
        # Sublane split (used when cols == 128): halves are multiples of 8 rows.
        half = rows // 2
        z0, z1 = box_muller_pair((half, cols))
        o_ref[:half, :] = x_ref[:half, :] + (mean_f + std_f * z0).astype(o_ref.dtype)
        o_ref[half:, :] = x_ref[half:, :] + (mean_f + std_f * z1).astype(o_ref.dtype)
    else:
        # Tiny / odd tiles: single Box-Muller branch (cos only).
        u1 = uniform_open((rows, cols))
        u2 = uniform((rows, cols))
        z = jnp.sqrt(jnp.float32(-2.0) * jnp.log(u1)) * jnp.cos(two_pi * u2)
        o_ref[...] = x_ref[...] + (mean_f + std_f * z).astype(o_ref.dtype)


def _add_noise_kernel(x_ref, n_ref, o_ref):
    """Portable fallback: fused add of precomputed noise."""
    o_ref[...] = x_ref[...] + n_ref[...].astype(o_ref.dtype)


def _pick_cols(n):
    for cols in (512, 256, 128):
        if n % cols == 0:
            return cols
    return None


def gaussian_noise_layer(x, seed, *, mean=0.0, std=0.2, training=True):
    """Forward pass of GaussianNoiseLayer.

    training=True : x + Gaussian(mean, std) noise of same shape/dtype.
    training=False: identity (matches nn.Module.eval()).
    """
    if not training:
        return x

    orig_shape = x.shape
    n = x.size

    cols = _pick_cols(n)
    pad = 0
    xf = jnp.reshape(x, (-1,))
    if cols is None:
        # Rare path: element count not a multiple of 128 -> pad the flat view.
        # TODO(synk): handle the tail with a masked store in the last grid
        # step instead of padding, to avoid the extra HBM copies.
        cols = _LANE
        pad = (-n) % cols
        xf = jnp.concatenate([xf, jnp.zeros((pad,), x.dtype)])
    x2 = xf.reshape(-1, cols)
    rows = x2.shape[0]

    block_rows = min(rows, max(8, _BLOCK_ELEMS // cols))
    grid = (pl.cdiv(rows, block_rows),)
    blk = (block_rows, cols)

    if jax.default_backend() == "tpu":
        if cols % 256 == 0:
            split_axis = 1          # lane split (each half >= 128 lanes)
        elif block_rows % 16 == 0:
            split_axis = 0          # sublane split (each half >= 8 rows)
        else:
            split_axis = -1         # no split (tiny tiles)
        kernel = functools.partial(
            _noise_kernel_tpu,
            mean=float(mean),
            std=float(std),
            split_axis=split_axis,
        )
        out2 = pl.pallas_call(
            kernel,
            out_shape=jax.ShapeDtypeStruct((rows, cols), x.dtype),
            grid_spec=pltpu.PrefetchScalarGridSpec(
                num_scalar_prefetch=1,
                grid=grid,
                in_specs=[pl.BlockSpec(blk, lambda i, seed: (i, 0))],
                out_specs=pl.BlockSpec(blk, lambda i, seed: (i, 0)),
            ),
            compiler_params=pltpu.CompilerParams(
                dimension_semantics=("parallel",)
            ),
        )(jnp.array([seed], dtype=jnp.int32), x2)
    else:
        # Non-TPU backend (e.g. CPU emulation): the TPU hardware PRNG
        # primitives have no lowering here, so draw the noise with jax.random
        # and fuse only the add inside the Pallas kernel.
        key = jax.random.PRNGKey(int(seed))
        noise = (
            jnp.float32(mean)
            + jnp.float32(std)
            * jax.random.normal(key, (rows, cols), dtype=jnp.float32)
        )
        out2 = pl.pallas_call(
            _add_noise_kernel,
            out_shape=jax.ShapeDtypeStruct((rows, cols), x.dtype),
            grid_spec=pltpu.PrefetchScalarGridSpec(
                num_scalar_prefetch=0,
                grid=grid,
                in_specs=[
                    pl.BlockSpec(blk, lambda i: (i, 0)),
                    pl.BlockSpec(blk, lambda i: (i, 0)),
                ],
                out_specs=pl.BlockSpec(blk, lambda i: (i, 0)),
            ),
            compiler_params=pltpu.CompilerParams(
                dimension_semantics=("parallel",)
            ),
        )(x2, noise)

    if pad:
        out2 = out2.reshape(-1)[:n]
    return out2.reshape(orig_shape)


if __name__ == "__main__":
    key = jax.random.PRNGKey(0)
    x = jax.random.normal(key, (2, 4, 16, 16), dtype=jnp.float32)

    # Training mode: x + noise.
    y = gaussian_noise_layer(x, seed=42, mean=0.0, std=0.2, training=True)
    y = jax.block_until_ready(y)
    assert y.shape == x.shape and y.dtype == x.dtype

    # The added noise should be roughly N(0, 0.2) and not identically zero.
    noise = y - x
    assert bool(jnp.all(jnp.isfinite(noise)))
    assert float(jnp.std(noise)) > 0.05
    assert float(jnp.std(noise)) < 1.0
    assert abs(float(jnp.mean(noise))) < 0.1

    # Eval mode: identity.
    y_eval = gaussian_noise_layer(x, seed=42, training=False)
    y_eval = jax.block_until_ready(y_eval)
    assert bool(jnp.all(y_eval == x))

    print("KERNEL_OK")
</pallas_src>

<mosaic_0001>
module attributes {stable_mosaic.version = 11 : i64} {
  func.func @_add_noise_kernel(%arg0: i32, %arg1: memref<4x512xf32, #tpu.memory_space<vmem>>, %arg2: memref<4x512xf32, #tpu.memory_space<vmem>>, %arg3: memref<4x512xf32, #tpu.memory_space<vmem>>) attributes {dimension_semantics = [#tpu.dimension_semantics<parallel>], iteration_bounds = array<i64: 1>, scalar_prefetch = 0 : i64, scratch_operands = 0 : i64, tpu.core_type = #tpu.core_type<tc>, window_params = [{transform_indices = @transform_0, window_bounds = array<i64: 4, 512>}, {transform_indices = @transform_1, window_bounds = array<i64: 4, 512>}, {transform_indices = @transform_2, window_bounds = array<i64: 4, 512>}]} {
    %c0 = arith.constant 0 : index
    %c0_0 = arith.constant 0 : index
    %0 = vector.load %arg1[%c0, %c0_0] : memref<4x512xf32, #tpu.memory_space<vmem>>, vector<4x512xf32>
    %c0_1 = arith.constant 0 : index
    %c0_2 = arith.constant 0 : index
    %1 = vector.load %arg2[%c0_1, %c0_2] : memref<4x512xf32, #tpu.memory_space<vmem>>, vector<4x512xf32>
    %2 = arith.addf %0, %1 : vector<4x512xf32>
    %c0_3 = arith.constant 0 : index
    %c0_4 = arith.constant 0 : index
    %3 = vector.load %arg3[%c0_3, %c0_4] : memref<4x512xf32, #tpu.memory_space<vmem>>, vector<4x512xf32>
    tpu.vector_store %arg3[%c0_3, %c0_4], %2 {strides = array<i32>} : memref<4x512xf32, #tpu.memory_space<vmem>>, vector<4x512xf32>,
    return
  }
  func.func @transform_0(%arg0: i32) -> (i32, i32) {
    %c0_i32 = arith.constant 0 : i32
    %c0_i32_0 = arith.constant 0 : i32
    return %arg0, %c0_i32 : i32, i32
  }
  func.func @transform_1(%arg0: i32) -> (i32, i32) {
    %c0_i32 = arith.constant 0 : i32
    %c0_i32_0 = arith.constant 0 : i32
    return %arg0, %c0_i32 : i32, i32
  }
  func.func @transform_2(%arg0: i32) -> (i32, i32) {
    %c0_i32 = arith.constant 0 : i32
    %c0_i32_0 = arith.constant 0 : i32
    return %arg0, %c0_i32 : i32, i32
  }
}

</mosaic_0001>

<bundles_post_ra>
// kernel: tpu_custom_call.1
= control target key start
LH: loop header
LB: loop body
LE: loop exit
PB: predicated region body
PF: predicated region fallthrough
CT: control target
= control target key end

     0   :  { %7 = vsyncpa [#allocation3], 0  ;;  %s189_s0 = inlined_call_operand.hbm [shape: f32[4,512], index: 0, kind: input, shape index: {}]   ;;  %s190_s1 = inlined_call_operand.hbm [shape: f32[4,512], index: 1, kind: input, shape index: {}]   ;;  %s191_s2 = inlined_call_operand.hbm [shape: f32[4,512], index: 2, kind: output, shape index: {}]  }
   0x1   :  { %8 = vsyncpa [#allocation6], 0 }
   0x2   :  { %9 = vsyncpa [#allocation4], 0  ;;  %s135_s9 = smov [#allocation2]   ;;  %s136_s11 = smov [#allocation5]  }
   0x3   :  { %s16_s10 = sshll.u32 %s135_s9, 4  ;;  %s26_s12 = sshll.u32 %s136_s11, 4  ;;  %s17_s10 = int_to_ptr.vmem [resolvable:$true] %s16_s10  ;;  %s27_s12 = int_to_ptr.vmem [resolvable:$true] %s26_s12 }
   0x4   :  { %s63_s15 = scalar_lea.hbm %s189_s0, 256 }
   0x5   :  { %p64_p0 = scmp.ne.s32.totalorder %s189_s0, %s63_s15  ;;  %p67_p1 = scmp.lt.u32.totalorder %s63_s15, %s189_s0 }
   0x7   :  { %p69_p2 = pnand %p67_p1, %p64_p0 }
   0x9   :  { %72 = shalt.err (!%p69_p2)
}
   0xa   :  { %s73_s20 = scalar_lea.vmem %s17_s10, 256  ;;  %p78_p4 = scmp.lt.s32.totalorder %s17_s10, %s17_s10 }
   0xb   :  { %p74_p3 = scmp.ne.s32.totalorder %s17_s10, %s73_s20  ;;  %p79_p5 = scmp.lt.s32.totalorder %s73_s20, %s73_s20 }
   0xd   :  { %p80_p6 = por %p79_p5, %p78_p4 }
   0xf   :  { %p81_p7 = pnand %p80_p6, %p74_p3 }
  0x11   :  { %84 = shalt.err (!%p81_p7)
}
  0x12   :  { %19 = dma.hbm_to_vmem [thread:$0]  %s189_s0, 256, %s17_s10, [#allocation3]  }
  0x13   :  { %s85_s25 = scalar_lea.hbm %s190_s1, 256 }
  0x14   :  { %p86_p8 = scmp.ne.s32.totalorder %s190_s1, %s85_s25  ;;  %p89_p9 = scmp.lt.u32.totalorder %s85_s25, %s190_s1 }
  0x16   :  { %p91_p10 = pnand %p89_p9, %p86_p8 }
  0x18   :  { %94 = shalt.err (!%p91_p10)
}
  0x19   :  { %s95_s30 = scalar_lea.vmem %s27_s12, 256  ;;  %p100_p12 = scmp.lt.s32.totalorder %s27_s12, %s27_s12 }
  0x1a   :  { %p96_p11 = scmp.ne.s32.totalorder %s27_s12, %s95_s30  ;;  %p101_p13 = scmp.lt.s32.totalorder %s95_s30, %s95_s30 }
  0x1c   :  { %p102_p0 = por %p101_p13, %p100_p12 }
  0x1e   :  { %p103_p1 = pnand %p102_p0, %p96_p11 }
  0x20   :  { %106 = shalt.err (!%p103_p1)
}
  0x21   :  { %29 = dma.hbm_to_vmem [thread:$0]  %s190_s1, 256, %s27_s12, [#allocation6]  }
  0x22   :  { %129 = dma.done.wait [#allocation3], 256  }
  0x23   :  { %130 = vsyncadd [#allocation3], 4294967040 }
  0x24   :  { %131 = dma.done.wait [#allocation6], 256  }
  0x25   :  { %132 = vsyncadd [#allocation6], 4294967040  ;;  %s137_s4 = smov [#allocation7]   ;;  %v36_v0 = vld [vmem:[#allocation2] sm:$0xff]  ;;  %v38_v1 = vld [vmem:[#allocation5] sm:$0xff] }
  0x26   :  { %s50_s5 = sshll.u32 %s137_s4, 4  ;;  %v37_v2 = vld [vmem:[#allocation2 + $0x8] sm:$0xff]  ;;  %v40_v3 = vadd.f32 %v38_v1, %v36_v0  ;;  %v39_v4 = vld [vmem:[#allocation5 + $0x8] sm:$0xff]  ;;  %s51_s5 = int_to_ptr.vmem [resolvable:$true] %s50_s5 }
  0x27   :  { %v41_v5 = vadd.f32 %v39_v4, %v37_v2  ;;  %s107_s6 = scalar_lea.vmem %s51_s5, 256  ;;  %p112_p3 = scmp.lt.s32.totalorder %s51_s5, %s51_s5 }
  0x28   :  { %42 = vst [vmem:[#allocation7] sm:$0xff] %v40_v3  ;;  %p108_p2 = scmp.ne.s32.totalorder %s51_s5, %s107_s6  ;;  %p113_p4 = scmp.lt.s32.totalorder %s107_s6, %s107_s6 }
  0x29   :  { %43 = vst [vmem:[#allocation7 + $0x8] sm:$0xff] %v41_v5 }
  0x2a   :  { %p114_p5 = por %p113_p4, %p112_p3 }
  0x2c   :  { %p115_p6 = pnand %p114_p5, %p108_p2 }
  0x2e   :  { %118 = shalt.err (!%p115_p6)
}
  0x2f   :  { %s119_s8 = scalar_lea.hbm %s191_s2, 256 }
  0x30   :  { %p120_p7 = scmp.ne.s32.totalorder %s191_s2, %s119_s8  ;;  %p123_p8 = scmp.lt.u32.totalorder %s119_s8, %s191_s2 }
  0x32   :  { %p125_p9 = pnand %p123_p8, %p120_p7 }
  0x34   :  { %128 = shalt.err (!%p125_p9)
}
  0x35   :  { %53 = dma.vmem_to_hbm [thread:$0]  %s51_s5, 256, %s191_s2, [#allocation4]  }
  0x36   :  { %133 = dma.done.wait [#allocation4], 256  }
  0x37   :  { %134 = vsyncadd [#allocation4], 4294967040 }
  0x38   :  { %57 = vsyncpa [#allocation3], 1 }
  0x39   :  { %58 = vsyncpa [#allocation6], 1 }
  0x3a   :  { %59 = vsyncpa [#allocation4], 1 }

</bundles_post_ra>
